<compile_context>
chip_gen: v7x
topology: tpu7x:2x2x1
jax: 0.10.0
libtpu: 0.0.40
codegen_flags: <defaults>
</compile_context>

<pallas_src>
import functools

import jax
import jax.numpy as jnp
from jax.experimental import pallas as pl
from jax.experimental.pallas import tpu as pltpu

NEG_SLOPE = 0.01   # nn.LeakyReLU default
N_CLASSES = 10
PAD_OUT = 128      # lane-dense padded output width


def _leaky_relu(x):
    return jnp.where(x > 0, x, NEG_SLOPE * x)


def mlp_kernel(x_ref, w1_ref, b1_ref, w2_ref, b2_ref, w3_ref, b3_ref, o_ref):
    # x_ref: (TB, 784) tile in its arrival dtype (f32 or bf16).
    # Weights are bf16 (MXU operands), biases f32 (added to the f32 accumulator).
    x = x_ref[...]
    if x.dtype != jnp.bfloat16:
        x = x.astype(jnp.bfloat16)   # VPU cast in-kernel; avoids a separate XLA cast pass

    # fc1 + LeakyReLU (bf16 MXU matmul, f32 accumulate & elementwise)
    h = jnp.dot(x, w1_ref[...], preferred_element_type=jnp.float32) + b1_ref[...]
    h = _leaky_relu(h)

    # fc2 + LeakyReLU
    h = jnp.dot(h.astype(jnp.bfloat16), w2_ref[...],
                preferred_element_type=jnp.float32) + b2_ref[...]
    h = _leaky_relu(h)

    # fc3, padded to 128 columns: padded weight cols are 0 and padded bias = -1e30,
    # so padded logits are -1e30 and exp() of them is exactly 0.  Keep this math f32.
    logits = jnp.dot(h.astype(jnp.bfloat16), w3_ref[...],
                     preferred_element_type=jnp.float32) + b3_ref[...]

    # softmax over the (lane-dense) 128-wide logits, all in f32
    m = jnp.max(logits, axis=1, keepdims=True)
    e = jnp.exp(logits - m)
    denom = jnp.sum(e, axis=1, keepdims=True)
    # store in bf16 (o_ref dtype); rows sum to ~1 within approx-reciprocal + bf16 rounding
    o_ref[...] = (e * pl.reciprocal(denom, approx=True)).astype(o_ref.dtype)


def _round_up(x, m):
    return ((x + m - 1) // m) * m


def _choose_blocking(B, tb):
    """Pick (padded batch Bp, batch tile).

    - tiny batches (<=128): pad only to a sublane multiple (8), single tile.
    - otherwise: tiles are multiples of 128 (lane/MXU friendly), capped at tb.
      Among 1..4-way splits choose the one with least padding; on ties prefer
      grid >= 2 (keeps both v7x TensorCores busy), then the largest tile
      (amortizes the ~0.35us per-grid-step overhead).
    """
    tb = max(128, (tb // 128) * 128)
    if B <= 128:
        Bp = _round_up(B, 8)
        return Bp, Bp
    best = None
    for parts in (1, 2, 3, 4):
        tile = min(tb, _round_up(-(-B // parts), 128))
        Bp = _round_up(B, tile)
        grid = Bp // tile
        key = (Bp, 0 if grid >= 2 else 1, -tile)
        if best is None or key < best[0]:
            best = (key, Bp, tile)
    return best[1], best[2]


def pack_params(params):
    """One-time parameter packing (hoisted out of the per-call forward path)."""
    w1, b1, w2, b2, w3, b3 = params
    w1b = w1.astype(jnp.bfloat16)
    w2b = w2.astype(jnp.bfloat16)
    # Pad fc3 to 128 output columns: zero weight columns, -1e30 bias entries.
    w3p = jnp.pad(w3, ((0, 0), (0, PAD_OUT - N_CLASSES))).astype(jnp.bfloat16)
    b3p = jnp.concatenate(
        [b3.reshape(1, -1).astype(jnp.float32),
         jnp.full((1, PAD_OUT - N_CLASSES), -1e30, jnp.float32)], axis=1)
    b1f = b1.reshape(1, -1).astype(jnp.float32)
    b2f = b2.reshape(1, -1).astype(jnp.float32)
    return (w1b, b1f, w2b, b2f, w3p, b3p)


@functools.partial(jax.jit, static_argnames=("tb",))
def teacher_forward(x, packed_params, tb=1024):
    """x: any shape that flattens to (-1, 784). Returns (B, 10) softmax probabilities."""
    w1b, b1f, w2b, b2f, w3p, b3p = packed_params

    x2 = x.reshape(-1, 784)            # no wrapper-side dtype cast: kernel casts the tile
    B = x2.shape[0]

    Bp, tile = _choose_blocking(B, tb)
    if Bp != B:
        x2 = jnp.pad(x2, ((0, Bp - B), (0, 0)))
    grid = Bp // tile

    out = pl.pallas_call(
        mlp_kernel,
        out_shape=jax.ShapeDtypeStruct((Bp, PAD_OUT), jnp.bfloat16),
        grid_spec=pltpu.PrefetchScalarGridSpec(
            num_scalar_prefetch=0,
            grid=(grid,),
            in_specs=[
                pl.BlockSpec((tile, 784), lambda i: (i, 0)),      # x tile (arrival dtype)
                pl.BlockSpec((784, 256), lambda i: (0, 0)),       # w1 (resident)
                pl.BlockSpec((1, 256), lambda i: (0, 0)),         # b1
                pl.BlockSpec((256, 128), lambda i: (0, 0)),       # w2
                pl.BlockSpec((1, 128), lambda i: (0, 0)),         # b2
                pl.BlockSpec((128, PAD_OUT), lambda i: (0, 0)),   # w3 (padded, lane-dense)
                pl.BlockSpec((1, PAD_OUT), lambda i: (0, 0)),     # b3 (padded)
            ],
            out_specs=pl.BlockSpec((tile, PAD_OUT), lambda i: (i, 0)),
        ),
        compiler_params=pltpu.CompilerParams(
            dimension_semantics=("parallel",),
            vmem_limit_bytes=48 * 1024 * 1024,   # headroom for 1024-row f32 tiles on v5e
        ),
    )(x2, w1b, b1f, w2b, b2f, w3p, b3p)

    # Module API: (B, 10) probabilities in f32 (padded columns are exactly 0).
    return out[:B, :N_CLASSES].astype(jnp.float32)


def init_params(key):
    """Deterministic init mimicking nn.Linear's U(-1/sqrt(fan_in), 1/sqrt(fan_in))."""
    def linear(k, fan_in, fan_out):
        kw, kb = jax.random.split(k)
        bound = 1.0 / jnp.sqrt(fan_in)
        # Stored transposed relative to PyTorch: (in, out) so kernel does x @ W.
        w = jax.random.uniform(kw, (fan_in, fan_out), jnp.float32, -bound, bound)
        b = jax.random.uniform(kb, (1, fan_out), jnp.float32, -bound, bound)
        return w, b

    k1, k2, k3 = jax.random.split(key, 3)
    w1, b1 = linear(k1, 784, 256)
    w2, b2 = linear(k2, 256, 128)
    w3, b3 = linear(k3, 128, N_CLASSES)
    return (w1, b1, w2, b2, w3, b3)


def _reference(x, params):
    """Pure-JAX reference mirroring the kernel's bf16-operand / f32-accumulate matmuls."""
    w1, b1, w2, b2, w3, b3 = params

    def lin(a, w, b):
        return jnp.dot(a.astype(jnp.bfloat16), w.astype(jnp.bfloat16),
                       preferred_element_type=jnp.float32) + b

    x2 = x.reshape(-1, 784)
    h = _leaky_relu(lin(x2, w1, b1))
    h = _leaky_relu(lin(h, w2, b2))
    logits = lin(h, w3, b3)
    return jax.nn.softmax(logits, axis=1)


if __name__ == "__main__":
    key = jax.random.PRNGKey(0)
    kx, kp, kx2, kx3 = jax.random.split(key, 4)

    params = init_params(kp)
    packed = pack_params(params)   # one-time packing (bf16 weights, padded fc3)

    # Tolerances account for bf16 output store + approx reciprocal (both documented).
    ATOL, RTOL = 5e-3, 5e-3

    # Small MNIST-style batch: (B, 1, 28, 28); forward flattens to (-1, 784).
    x = jax.random.normal(kx, (2, 1, 28, 28), jnp.float32)
    out = teacher_forward(x, packed)
    jax.block_until_ready(out)
    ref = _reference(x, params)
    assert out.shape == (2, N_CLASSES)
    assert jnp.allclose(out, ref, atol=ATOL, rtol=RTOL), "mismatch vs reference (small batch)"
    assert jnp.allclose(jnp.sum(out, axis=1), 1.0, atol=1e-2), "softmax rows must sum to ~1"

    # 600-row batch: pads to 640 (one lane-dense tile, <7% padded rows).
    xl = jax.random.normal(kx2, (600, 784), jnp.float32)
    outl = teacher_forward(xl, packed)
    jax.block_until_ready(outl)
    refl = _reference(xl, params)
    assert outl.shape == (600, N_CLASSES)
    assert jnp.allclose(outl, refl, atol=ATOL, rtol=RTOL), "mismatch vs reference (600 batch)"
    assert jnp.allclose(jnp.sum(outl, axis=1), 1.0, atol=1e-2), "softmax rows must sum to ~1"

    # 512-row batch: grid of 2 tiles (multi-step grid; both v7x TensorCores get work).
    xm = jax.random.normal(kx3, (512, 784), jnp.float32)
    outm = teacher_forward(xm, packed)
    jax.block_until_ready(outm)
    refm = _reference(xm, params)
    assert outm.shape == (512, N_CLASSES)
    assert jnp.allclose(outm, refm, atol=ATOL, rtol=RTOL), "mismatch vs reference (512 batch)"
    assert jnp.allclose(jnp.sum(outm, axis=1), 1.0, atol=1e-2), "softmax rows must sum to ~1"

    print("KERNEL_OK")
</pallas_src>

<mosaic_0001>
module attributes {stable_mosaic.version = 11 : i64} {
  func.func @mlp_kernel(%arg0: i32, %arg1: memref<8x784xf32, #tpu.memory_space<vmem>>, %arg2: memref<784x256xbf16, #tpu.memory_space<vmem>>, %arg3: memref<1x256xf32, #tpu.memory_space<vmem>>, %arg4: memref<256x128xbf16, #tpu.memory_space<vmem>>, %arg5: memref<1x128xf32, #tpu.memory_space<vmem>>, %arg6: memref<128x128xbf16, #tpu.memory_space<vmem>>, %arg7: memref<1x128xf32, #tpu.memory_space<vmem>>, %arg8: memref<8x128xbf16, #tpu.memory_space<vmem>>) attributes {dimension_semantics = [#tpu.dimension_semantics<parallel>], iteration_bounds = array<i64: 1>, scalar_prefetch = 0 : i64, scratch_operands = 0 : i64, tpu.core_type = #tpu.core_type<tc>, window_params = [{transform_indices = @transform_0, window_bounds = array<i64: 8, 784>}, {pipeline_mode = #tpu.pipeline_mode<synchronous>, transform_indices = @transform_1, window_bounds = array<i64: 784, 256>}, {pipeline_mode = #tpu.pipeline_mode<synchronous>, transform_indices = @transform_2, window_bounds = array<i64: 1, 256>}, {pipeline_mode = #tpu.pipeline_mode<synchronous>, transform_indices = @transform_3, window_bounds = array<i64: 256, 128>}, {pipeline_mode = #tpu.pipeline_mode<synchronous>, transform_indices = @transform_4, window_bounds = array<i64: 1, 128>}, {pipeline_mode = #tpu.pipeline_mode<synchronous>, transform_indices = @transform_5, window_bounds = array<i64: 128, 128>}, {pipeline_mode = #tpu.pipeline_mode<synchronous>, transform_indices = @transform_6, window_bounds = array<i64: 1, 128>}, {transform_indices = @transform_7, window_bounds = array<i64: 8, 128>}]} {
    %c0 = arith.constant 0 : index
    %c0_0 = arith.constant 0 : index
    %0 = vector.load %arg1[%c0, %c0_0] : memref<8x784xf32, #tpu.memory_space<vmem>>, vector<8x784xf32>
    %1 = arith.truncf %0 : vector<8x784xf32> to vector<8x784xbf16>
    %c0_1 = arith.constant 0 : index
    %c0_2 = arith.constant 0 : index
    %2 = vector.load %arg2[%c0_1, %c0_2] : memref<784x256xbf16, #tpu.memory_space<vmem>>, vector<784x256xbf16>
    %cst = arith.constant dense<0.000000e+00> : vector<8x256xf32>
    %3 = tpu.matmul %1, %2, %cst {dimension_numbers = #tpu.dot_dimension_numbers<[1], [0], [0], [1], [0, 0, 1, 1], [], []>} : vector<8x784xbf16>, vector<784x256xbf16>, vector<8x256xf32> -> vector<8x256xf32>
    %c0_3 = arith.constant 0 : index
    %c0_4 = arith.constant 0 : index
    %4 = vector.load %arg3[%c0_3, %c0_4] : memref<1x256xf32, #tpu.memory_space<vmem>>, vector<1x256xf32>
    %5 = vector.broadcast %4 : vector<1x256xf32> to vector<8x256xf32>
    %6 = arith.addf %3, %5 : vector<8x256xf32>
    %cst_5 = arith.constant 0.000000e+00 : f32
    %7 = vector.broadcast %cst_5 : f32 to vector<8x256xf32>
    %8 = arith.cmpf ogt, %6, %7 : vector<8x256xf32>
    %cst_6 = arith.constant 0.00999999977 : f32
    %9 = vector.broadcast %cst_6 : f32 to vector<8x256xf32>
    %10 = arith.mulf %9, %6 : vector<8x256xf32>
    %11 = arith.select %8, %6, %10 : vector<8x256xi1>, vector<8x256xf32>
    %12 = arith.truncf %11 : vector<8x256xf32> to vector<8x256xbf16>
    %c0_7 = arith.constant 0 : index
    %c0_8 = arith.constant 0 : index
    %13 = vector.load %arg4[%c0_7, %c0_8] : memref<256x128xbf16, #tpu.memory_space<vmem>>, vector<256x128xbf16>
    %cst_9 = arith.constant dense<0.000000e+00> : vector<8x128xf32>
    %14 = tpu.matmul %12, %13, %cst_9 {dimension_numbers = #tpu.dot_dimension_numbers<[1], [0], [0], [1], [0, 0, 1, 1], [], []>} : vector<8x256xbf16>, vector<256x128xbf16>, vector<8x128xf32> -> vector<8x128xf32>
    %c0_10 = arith.constant 0 : index
    %c0_11 = arith.constant 0 : index
    %15 = vector.load %arg5[%c0_10, %c0_11] : memref<1x128xf32, #tpu.memory_space<vmem>>, vector<1x128xf32>
    %16 = vector.broadcast %15 : vector<1x128xf32> to vector<8x128xf32>
    %17 = arith.addf %14, %16 : vector<8x128xf32>
    %cst_12 = arith.constant 0.000000e+00 : f32
    %18 = vector.broadcast %cst_12 : f32 to vector<8x128xf32>
    %19 = arith.cmpf ogt, %17, %18 : vector<8x128xf32>
    %cst_13 = arith.constant 0.00999999977 : f32
    %20 = vector.broadcast %cst_13 : f32 to vector<8x128xf32>
    %21 = arith.mulf %20, %17 : vector<8x128xf32>
    %22 = arith.select %19, %17, %21 : vector<8x128xi1>, vector<8x128xf32>
    %23 = arith.truncf %22 : vector<8x128xf32> to vector<8x128xbf16>
    %c0_14 = arith.constant 0 : index
    %c0_15 = arith.constant 0 : index
    %24 = vector.load %arg6[%c0_14, %c0_15] : memref<128x128xbf16, #tpu.memory_space<vmem>>, vector<128x128xbf16>
    %cst_16 = arith.constant dense<0.000000e+00> : vector<8x128xf32>
    %25 = tpu.matmul %23, %24, %cst_16 {dimension_numbers = #tpu.dot_dimension_numbers<[1], [0], [0], [1], [0, 0, 1, 1], [], []>} : vector<8x128xbf16>, vector<128x128xbf16>, vector<8x128xf32> -> vector<8x128xf32>
    %c0_17 = arith.constant 0 : index
    %c0_18 = arith.constant 0 : index
    %26 = vector.load %arg7[%c0_17, %c0_18] : memref<1x128xf32, #tpu.memory_space<vmem>>, vector<1x128xf32>
    %27 = vector.broadcast %26 : vector<1x128xf32> to vector<8x128xf32>
    %28 = arith.addf %25, %27 : vector<8x128xf32>
    %cst_19 = arith.constant dense<0xFF800000> : vector<8xf32>
    %29 = vector.multi_reduction <maximumf>, %28, %cst_19 [1] : vector<8x128xf32> to vector<8xf32>
    %30 = vector.shape_cast %29 : vector<8xf32> to vector<8x1xf32>
    %31 = vector.broadcast %30 : vector<8x1xf32> to vector<8x128xf32>
    %32 = arith.subf %28, %31 : vector<8x128xf32>
    %33 = math.exp %32 : vector<8x128xf32>
    %cst_20 = arith.constant dense<0.000000e+00> : vector<8xf32>
    %34 = vector.multi_reduction <add>, %33, %cst_20 [1] : vector<8x128xf32> to vector<8xf32>
    %35 = vector.shape_cast %34 : vector<8xf32> to vector<8x1xf32>
    %36 = tpu.reciprocal %35 {approx = true} : vector<8x1xf32> -> vector<8x1xf32>
    %37 = vector.broadcast %36 : vector<8x1xf32> to vector<8x128xf32>
    %38 = arith.mulf %33, %37 : vector<8x128xf32>
    %39 = arith.truncf %38 : vector<8x128xf32> to vector<8x128xbf16>
    %c0_21 = arith.constant 0 : index
    %c0_22 = arith.constant 0 : index
    %40 = vector.load %arg8[%c0_21, %c0_22] : memref<8x128xbf16, #tpu.memory_space<vmem>>, vector<8x128xbf16>
    tpu.vector_store %arg8[%c0_21, %c0_22], %39 {strides = array<i32>} : memref<8x128xbf16, #tpu.memory_space<vmem>>, vector<8x128xbf16>,
    return
  }
  func.func @transform_0(%arg0: i32) -> (i32, i32) {
    %c0_i32 = arith.constant 0 : i32
    %c0_i32_0 = arith.constant 0 : i32
    return %arg0, %c0_i32 : i32, i32
  }
  func.func @transform_1(%arg0: i32) -> (i32, i32) {
    %c0_i32 = arith.constant 0 : i32
    %c0_i32_0 = arith.constant 0 : i32
    %c0_i32_1 = arith.constant 0 : i32
    return %c0_i32, %c0_i32_0 : i32, i32
  }
  func.func @transform_2(%arg0: i32) -> (i32, i32) {
    %c0_i32 = arith.constant 0 : i32
    %c0_i32_0 = arith.constant 0 : i32
    %c0_i32_1 = arith.constant 0 : i32
    return %c0_i32, %c0_i32_0 : i32, i32
  }
  func.func @transform_3(%arg0: i32) -> (i32, i32) {
    %c0_i32 = arith.constant 0 : i32
    %c0_i32_0 = arith.constant 0 : i32
    %c0_i32_1 = arith.constant 0 : i32
    return %c0_i32, %c0_i32_0 : i32, i32
  }
  func.func @transform_4(%arg0: i32) -> (i32, i32) {
    %c0_i32 = arith.constant 0 : i32
    %c0_i32_0 = arith.constant 0 : i32
    %c0_i32_1 = arith.constant 0 : i32
    return %c0_i32, %c0_i32_0 : i32, i32
  }
  func.func @transform_5(%arg0: i32) -> (i32, i32) {
    %c0_i32 = arith.constant 0 : i32
    %c0_i32_0 = arith.constant 0 : i32
    %c0_i32_1 = arith.constant 0 : i32
    return %c0_i32, %c0_i32_0 : i32, i32
  }
  func.func @transform_6(%arg0: i32) -> (i32, i32) {
    %c0_i32 = arith.constant 0 : i32
    %c0_i32_0 = arith.constant 0 : i32
    %c0_i32_1 = arith.constant 0 : i32
    return %c0_i32, %c0_i32_0 : i32, i32
  }
  func.func @transform_7(%arg0: i32) -> (i32, i32) {
    %c0_i32 = arith.constant 0 : i32
    %c0_i32_0 = arith.constant 0 : i32
    return %arg0, %c0_i32 : i32, i32
  }
}

</mosaic_0001>

<bundles_post_ra>
// kernel: teacher_forward.1
= control target key start
LH: loop header
LB: loop body
LE: loop exit
PB: predicated region body
PF: predicated region fallthrough
CT: control target
= control target key end

     0   :  { %12 = vsyncpa [#allocation3], 0  ;;  %s1530_s24 = smov [#allocation2]   ;;  %s1693_s0 = inlined_call_operand.vmem [shape: f32[8,784], index: 0, kind: input, shape index: {}]   ;;  %s1694_s1 = inlined_call_operand.hbm [shape: bf16[784,256], index: 1, kind: input, shape index: {}]   ;;  %s1695_s2 = inlined_call_operand.vmem [shape: f32[1,256], index: 2, kind: input, shape index: {}]   ;;  %s1696_s3 = inlined_call_operand.vmem [shape: bf16[256,128], index: 3, kind: input, shape index: {}]   ;;  %s1697_s4 = inlined_call_operand.vmem [shape: f32[1,128], index: 4, kind: input, shape index: {}]   ;;  %s1698_s5 = inlined_call_operand.vmem [shape: bf16[128,128], index: 5, kind: input, shape index: {}]   ;;  %s1699_s6 = inlined_call_operand.vmem [shape: f32[1,128], index: 6, kind: input, shape index: {}]   ;;  %s1700_s7 = inlined_call_operand.vmem [shape: bf16[8,128], index: 7, kind: output, shape index: {}]  }
   0x1   :  { %s20_s25 = sshll.u32 %s1530_s24, 4  ;;  %s1506_s28 = scalar_lea.hbm %s1694_s1, 12544  ;;  %s21_s25 = int_to_ptr.vmem [resolvable:$true] %s20_s25 }
   0x2   :  { %p1507_p0 = scmp.ne.s32.totalorder %s1694_s1, %s1506_s28  ;;  %p1510_p1 = scmp.lt.u32.totalorder %s1506_s28, %s1694_s1 }
   0x4   :  { %p1512_p2 = pnand %p1510_p1, %p1507_p0 }
   0x6   :  { %1515 = shalt.err (!%p1512_p2)
}
   0x7   :  { %s1516_s10 = scalar_lea.vmem %s21_s25, 12544  ;;  %p1521_p4 = scmp.lt.s32.totalorder %s21_s25, %s21_s25 }
   0x8   :  { %p1517_p3 = scmp.ne.s32.totalorder %s21_s25, %s1516_s10  ;;  %p1522_p5 = scmp.lt.s32.totalorder %s1516_s10, %s1516_s10 }
   0xa   :  { %p1523_p6 = por %p1522_p5, %p1521_p4 }
   0xc   :  { %p1524_p7 = pnand %p1523_p6, %p1517_p3 }
   0xe   :  { %1527 = shalt.err (!%p1524_p7)
}
   0xf   :  { %s1531_s11 = smov 128   ;;  %s1532_s12 = smov 8  }
  0x10   :  { %26 = dma.hbm_to_vmem [thread:$0]  %s1694_s1, 12544, %s21_s25, [#allocation3], %s1531_s11, %s1531_s11, %s1532_s12  }
  0x11   :  { %1528 = dma.done.wait [#allocation3], 12544  }
  0x12   :  { %1529 = vsyncadd [#allocation3], 4294954752  ;;  %v1331_v0 = vld [vmem:[#allocation2 + $0x104] ss:$8 sps:$4 sm:$0xff]   ;;  %v1333_v1 = vld [vmem:[#allocation2 + $0x100] ss:$8 sps:$4 sm:$0xff]  }
  0x13   :  { %700 = vmatprep.subr.bf16.mxu0 %v1331_v0  ;;  %v1334_v2 = vld [vmem:[#allocation2 + $0x114] ss:$8 sps:$4 sm:$0xff]   ;;  %v1336_v3 = vld [vmem:[#allocation2 + $0x110] ss:$8 sps:$4 sm:$0xff]   ;;  %v1337_v4 = vld [vmem:[#allocation2 + $0x124] ss:$8 sps:$4 sm:$0xff]  }
  0x14   :  { %701 = vmatpush1.bf16.msra.mxu0 %v1333_v1  ;;  %v1339_v5 = vld [vmem:[#allocation2 + $0x120] ss:$8 sps:$4 sm:$0xff]   ;;  %v1340_v6 = vld [vmem:[#allocation2 + $0x134] ss:$8 sps:$4 sm:$0xff]   ;;  %v1342_v7 = vld [vmem:[#allocation2 + $0x130] ss:$8 sps:$4 sm:$0xff]  }
  0x15   :  { %702 = vmatprep.subr.bf16.mxu0 %v1334_v2  ;;  %v1343_v8 = vld [vmem:[#allocation2 + $0x144] ss:$8 sps:$4 sm:$0xff]   ;;  %v1345_v9 = vld [vmem:[#allocation2 + $0x140] ss:$8 sps:$4 sm:$0xff]   ;;  %v1346_v10 = vld [vmem:[#allocation2 + $0x154] ss:$8 sps:$4 sm:$0xff]  }
  0x16   :  { %v1348_v11 = vld [vmem:[#allocation2 + $0x150] ss:$8 sps:$4 sm:$0xff]   ;;  %v1349_v12 = vld [vmem:[#allocation2 + $0x164] ss:$8 sps:$4 sm:$0xff]   ;;  %v1351_v15 = vld [vmem:[#allocation2 + $0x160] ss:$8 sps:$4 sm:$0xff]  }
  0x17   :  { %v44_v13 = vld [vmem:[%s1693_s0 + $0x18] sm:$0xff]  ;;  %v1385_v17 = vld [vmem:[#allocation2 + $0x4] ss:$8 sps:$4 sm:$0xff]   ;;  %v1390_v20 = vld [vmem:[#allocation2] ss:$8 sps:$4 sm:$0xff]   ;;  %vm655_vm0 = vcmask 130048  }
  0x18   :  { %703 = vmatpush1.bf16.msra.mxu0 %v1336_v3  ;;  %v51_v14 = vpack.c.bf16 %v44_v13, %v44_v13  ;;  %v1352_v16 = vld [vmem:[#allocation2 + $0x174] ss:$8 sps:$4 sm:$0xff]   ;;  %v1354_v18 = vld [vmem:[#allocation2 + $0x170] ss:$8 sps:$4 sm:$0xff]   ;;  %v1355_v19 = vld [vmem:[#allocation2 + $0x184] ss:$8 sps:$4 sm:$0xff]   ;;  %659 = vmatprep.subr.bf16.mxu1 %v1385_v17 }
  0x19   :  { %704 = vmatprep.subr.bf16.mxu0 %v1337_v4  ;;  %v1391_v21 = vld [vmem:[#allocation2 + $0x14] ss:$8 sps:$4 sm:$0xff]   ;;  %660 = vmatpush1.bf16.msra.mxu1 %v1390_v20  ;;  %v1396_v22 = vld [vmem:[#allocation2 + $0x10] ss:$8 sps:$4 sm:$0xff]   ;;  %v1397_v23 = vld [vmem:[#allocation2 + $0x24] ss:$8 sps:$4 sm:$0xff]  }
  0x1a   :  { %732 = vmatprep.mubr.bf16.mxu0 %v51_v14  ;;  %661 = vmatprep.subr.bf16.mxu1 %v1391_v21  ;;  %v1357_v24 = vld [vmem:[#allocation2 + $0x180] ss:$8 sps:$4 sm:$0xff]   ;;  %v1358_v25 = vld [vmem:[#allocation2 + $0x194] ss:$8 sps:$4 sm:$0xff]   ;;  %v1360_v28 = vld [vmem:[#allocation2 + $0x190] ss:$8 sps:$4 sm:$0xff]  }
  0x1b   :  { %v1402_v26 = vld [vmem:[#allocation2 + $0x20] ss:$8 sps:$4 sm:$0xff]   ;;  %v1403_v27 = vld [vmem:[#allocation2 + $0x34] ss:$8 sps:$4 sm:$0xff]   ;;  %v1361_v29 = vld [vmem:[#allocation2 + $0x1a4] ss:$8 sps:$4 sm:$0xff]  }
  0x1c   :  { %705 = vmatpush1.bf16.msra.mxu0 %v1339_v5  ;;  %v1408_v30 = vld [vmem:[#allocation2 + $0x30] ss:$8 sps:$4 sm:$0xff]   ;;  %v1409_v31 = vld [vmem:[#allocation2 + $0x44] ss:$8 sps:$4 sm:$0xff]   ;;  %v1363_v32 = vld [vmem:[#allocation2 + $0x1a0] ss:$8 sps:$4 sm:$0xff]  }
  0x1d   :  { %706 = vmatprep.subr.bf16.mxu0 %v1340_v6  ;;  %662 = vmatpush1.bf16.msra.mxu1 %v1396_v22  ;;  %v1364_v33 = vld [vmem:[#allocation2 + $0x1b4] ss:$8 sps:$4 sm:$0xff]   ;;  %v1414_v34 = vld [vmem:[#allocation2 + $0x40] ss:$8 sps:$4 sm:$0xff]   ;;  %v1366_v36 = vld [vmem:[#allocation2 + $0x1b0] ss:$8 sps:$4 sm:$0xff]  }
  0x1e   :  { %663 = vmatprep.subr.bf16.mxu1 %v1397_v23  ;;  %v1415_v35 = vld [vmem:[#allocation2 + $0x54] ss:$8 sps:$4 sm:$0xff]   ;;  %v1367_v37 = vld [vmem:[#allocation2 + $0x1c4] ss:$8 sps:$4 sm:$0xff]   ;;  %v1420_v38 = vld [vmem:[#allocation2 + $0x50] ss:$8 sps:$4 sm:$0xff]  }
  0x1f   :  { %v1421_v39 = vld [vmem:[#allocation2 + $0x64] ss:$8 sps:$4 sm:$0xff]   ;;  %v1369_v40 = vld [vmem:[#allocation2 + $0x1c0] ss:$8 sps:$4 sm:$0xff]   ;;  %v1370_v41 = vld [vmem:[#allocation2 + $0x1d4] ss:$8 sps:$4 sm:$0xff]  }
  0x20   :  { %707 = vmatpush1.bf16.msra.mxu0 %v1342_v7  ;;  %v1426_v42 = vld [vmem:[#allocation2 + $0x60] ss:$8 sps:$4 sm:$0xff]   ;;  %v1427_v43 = vld [vmem:[#allocation2 + $0x74] ss:$8 sps:$4 sm:$0xff]   ;;  %v1372_v44 = vld [vmem:[#allocation2 + $0x1d0] ss:$8 sps:$4 sm:$0xff]  }
  0x21   :  { %708 = vmatprep.subr.bf16.mxu0 %v1343_v8  ;;  %664 = vmatpush1.bf16.msra.mxu1 %v1402_v26  ;;  %v1373_v45 = vld [vmem:[#allocation2 + $0x1e4] ss:$8 sps:$4 sm:$0xff]   ;;  %v1432_v46 = vld [vmem:[#allocation2 + $0x70] ss:$8 sps:$4 sm:$0xff]   ;;  %v1375_v48 = vld [vmem:[#allocation2 + $0x1e0] ss:$8 sps:$4 sm:$0xff]  }
  0x22   :  { %665 = vmatprep.subr.bf16.mxu1 %v1403_v27  ;;  %v1433_v47 = vld [vmem:[#allocation2 + $0x84] ss:$8 sps:$4 sm:$0xff]   ;;  %v1376_v49 = vld [vmem:[#allocation2 + $0x1f4] ss:$8 sps:$4 sm:$0xff]   ;;  %v1438_v50 = vld [vmem:[#allocation2 + $0x80] ss:$8 sps:$4 sm:$0xff]  }
  0x23   :  { %v1378_v51 = vld [vmem:[#allocation2 + $0x1f0] ss:$8 sps:$4 sm:$0xff]   ;;  %v1439_v52 = vld [vmem:[#allocation2 + $0x94] ss:$8 sps:$4 sm:$0xff]   ;;  %v1381_v54 = vld [vmem:[#allocation2 + $0x204] ss:$8 sps:$4 sm:$0xff]  }
  0x24   :  { %709 = vmatpush1.bf16.msra.mxu0 %v1345_v9  ;;  %v43_v53 = vld [vmem:[%s1693_s0 + $0x10] sm:$0xff]  ;;  %v1445_v56 = vld [vmem:[#allocation2 + $0xa4] ss:$8 sps:$4 sm:$0xff]   ;;  %v1379_v59 = vld [vmem:[#allocation2 + $0x200] ss:$8 sps:$4 sm:$0xff]   ;;  %vm1535_vm3 = vmmov 0  }
  0x25   :  { %710 = vmatprep.subr.bf16.mxu0 %v1346_v10  ;;  %666 = vmatpush1.bf16.msra.mxu1 %v1408_v30  ;;  %v1444_v55 = vld [vmem:[#allocation2 + $0x90] ss:$8 sps:$4 sm:$0xff]   ;;  %v50_v57 = vpack.c.bf16 %v43_v53, %v43_v53  ;;  %v46_v58 = vld [vmem:[%s1693_s0 + $0x28] sm:$0xff]  ;;  %v1384_v61 = vld [vmem:[#allocation2 + $0x214] ss:$8 sps:$4 sm:$0xff]  }
  0x26   :  { %667 = vmatprep.subr.bf16.mxu1 %v1409_v31  ;;  %v53_v60 = vpack.c.bf16 %v46_v58, %v46_v58  ;;  %v1450_v62 = vld [vmem:[#allocation2 + $0xa0] ss:$8 sps:$4 sm:$0xff]   ;;  %v1451_v63 = vld [vmem:[#allocation2 + $0xb4] ss:$8 sps:$4 sm:$0xff]   ;;  %v1382_v1 = vld [vmem:[#allocation2 + $0x210] ss:$8 sps:$4 sm:$0xff]  }
  0x27   :  { %v42_v0 = vld [vmem:[%s1693_s0 + $0x8] sm:$0xff]  ;;  %v1456_v4 = vld [vmem:[#allocation2 + $0xb0] ss:$8 sps:$4 sm:$0xff]   ;;  %v1395_v7 = vld [vmem:[#allocation2 + $0x234] ss:$8 sps:$4 sm:$0xff]  }
  0x28   :  { %711 = vmatpush1.bf16.msra.mxu0 %v1348_v11  ;;  %v49_v2 = vpack.c.bf16 %v42_v0, %v42_v0  ;;  %v1389_v3 = vld [vmem:[#allocation2 + $0x224] ss:$8 sps:$4 sm:$0xff]   ;;  %v1387_v6 = vld [vmem:[#allocation2 + $0x220] ss:$8 sps:$4 sm:$0xff]   ;;  %v1463_v9 = vld [vmem:[#allocation2 + $0xd4] ss:$8 sps:$4 sm:$0xff]  }
  0x29   :  { %712 = vmatprep.subr.bf16.mxu0 %v1349_v12  ;;  %668 = vmatpush1.bf16.msra.mxu1 %v1414_v34  ;;  %v1457_v5 = vld [vmem:[#allocation2 + $0xc4] ss:$8 sps:$4 sm:$0xff]   ;;  %v1462_v8 = vld [vmem:[#allocation2 + $0xc0] ss:$8 sps:$4 sm:$0xff]   ;;  %v1393_v10 = vld [vmem:[#allocation2 + $0x230] ss:$8 sps:$4 sm:$0xff]  }
  0x2a   :  { %669 = vmatprep.subr.bf16.mxu1 %v1415_v35  ;;  %691 = vmatprep.mubr.bf16.mxu1 %v49_v2  ;;  %v1401_v11 = vld [vmem:[#allocation2 + $0x244] ss:$8 sps:$4 sm:$0xff]   ;;  %v1399_v12 = vld [vmem:[#allocation2 + $0x240] ss:$8 sps:$4 sm:$0xff]   ;;  %v1468_v13 = vld [vmem:[#allocation2 + $0xd0] ss:$8 sps:$4 sm:$0xff]  }
  0x2b   :  { %v1469_v14 = vld [vmem:[#allocation2 + $0xe4] ss:$8 sps:$4 sm:$0xff]   ;;  %v1475_v17 = vld [vmem:[#allocation2 + $0xf4] ss:$8 sps:$4 sm:$0xff]   ;;  %v1477_v20 = vld [vmem:[#allocation2 + $0xf0] ss:$8 sps:$4 sm:$0xff]  }
  0x2c   :  { %713 = vmatpush1.bf16.msra.mxu0 %v1351_v15  ;;  %v1407_v15 = vld [vmem:[#allocation2 + $0x254] ss:$8 sps:$4 sm:$0xff]   ;;  %v41_v21 = vld [vmem:[%s1693_s0] sm:$0xff]  ;;  %v1480_v27 = vld [vmem:[%s1696_s3 + $0x48] sm:$0xff]  }
  0x2d   :  { %714 = vmatprep.subr.bf16.mxu0 %v1352_v16  ;;  %670 = vmatpush1.bf16.msra.mxu1 %v1420_v38  ;;  %v1474_v16 = vld [vmem:[#allocation2 + $0xe0] ss:$8 sps:$4 sm:$0xff]   ;;  %v1482_v31 = vld [vmem:[%s1696_s3 + $0x50] sm:$0xff]   ;;  %v1484_v35 = vld [vmem:[%s1696_s3 + $0x58] sm:$0xff]  }
  0x2e   :  { %671 = vmatprep.subr.bf16.mxu1 %v1421_v39  ;;  %v1478_v22 = vld [vmem:[%s1696_s3 + $0x40] sm:$0xff]   ;;  %v1481_v30 = vld [vmem:[%s1696_s3 + $0x8] sm:$0xff]   ;;  %v1483_v34 = vld [vmem:[%s1696_s3 + $0x10] sm:$0xff]  }
  0x2f   :  { %v1411_v23 = vld [vmem:[#allocation2 + $0x260] ss:$8 sps:$4 sm:$0xff]   ;;  %v1485_v38 = vld [vmem:[%s1696_s3 + $0x18] sm:$0xff]   ;;  %v1473_v53 = vld [vmem:[#allocation2 + $0x304] ss:$8 sps:$4 sm:$0xff]  }
  0x30   :  { %715 = vmatpush1.bf16.msra.mxu0 %v1354_v18  ;;  %v1405_v18 = vld [vmem:[#allocation2 + $0x250] ss:$8 sps:$4 sm:$0xff]   ;;  %v1479_v26 = vld [vmem:[%s1696_s3] sm:$0xff]  }
  0x31   :  { %716 = vmatprep.subr.bf16.mxu0 %v1355_v19  ;;  %672 = vmatpush1.bf16.msra.mxu1 %v1426_v42  ;;  %v1413_v19 = vld [vmem:[#allocation2 + $0x264] ss:$8 sps:$4 sm:$0xff]   ;;  %v1493_v0 = vld [vmem:[%s1696_s3 + $0x38] sm:$0xff]  }
  0x32   :  { %673 = vmatprep.subr.bf16.mxu1 %v1427_v43  ;;  %v1486_v39 = vld [vmem:[%s1696_s3 + $0x60] sm:$0xff]   ;;  %v1441_v43 = vld [vmem:[#allocation2 + $0x2b0] ss:$8 sps:$4 sm:$0xff]  }
  0x33   :  { %v1487_v42 = vld [vmem:[%s1696_s3 + $0x20] sm:$0xff]  }
  0x34   :  { %717 = vmatpush1.bf16.msra.mxu0 %v1357_v24  ;;  %v1419_v24 = vld [vmem:[#allocation2 + $0x274] ss:$8 sps:$4 sm:$0xff]  }
  0x35   :  { %718 = vmatprep.subr.bf16.mxu0 %v1358_v25  ;;  %674 = vmatpush1.bf16.msra.mxu1 %v1432_v46  ;;  %v48_v25 = vpack.c.bf16 %v41_v21, %v41_v21  ;;  %v1455_v46 = vld [vmem:[#allocation2 + $0x2d4] ss:$8 sps:$4 sm:$0xff]  }
  0x36   :  { %675 = vmatprep.subr.bf16.mxu1 %v1433_v47  ;;  %v1453_v47 = vld [vmem:[#allocation2 + $0x2d0] ss:$8 sps:$4 sm:$0xff]  }
  0x38   :  { %719 = vmatpush1.bf16.msra.mxu0 %v1360_v28  ;;  %v1417_v28 = vld [vmem:[#allocation2 + $0x270] ss:$8 sps:$4 sm:$0xff]  }
  0x39   :  { %720 = vmatprep.subr.bf16.mxu0 %v1361_v29  ;;  %676 = vmatpush1.bf16.msra.mxu1 %v1438_v50  ;;  %v1425_v29 = vld [vmem:[#allocation2 + $0x284] ss:$8 sps:$4 sm:$0xff]   ;;  %v1467_v50 = vld [vmem:[#allocation2 + $0x2f4] ss:$8 sps:$4 sm:$0xff]  }
  0x3a   :  { %677 = vmatprep.subr.bf16.mxu1 %v1439_v52  ;;  %v45_v52 = vld [vmem:[%s1693_s0 + $0x20] sm:$0xff] }
  0x3c   :  { %721 = vmatpush1.bf16.msra.mxu0 %v1363_v32  ;;  %v1423_v32 = vld [vmem:[#allocation2 + $0x280] ss:$8 sps:$4 sm:$0xff]  }
  0x3d   :  { %722 = vmatprep.subr.bf16.mxu0 %v1364_v33  ;;  %678 = vmatpush1.bf16.msra.mxu1 %v1444_v55  ;;  %v1431_v33 = vld [vmem:[#allocation2 + $0x294] ss:$8 sps:$4 sm:$0xff]   ;;  %v1471_v55 = vld [vmem:[#allocation2 + $0x300] ss:$8 sps:$4 sm:$0xff]  }
  0x3e   :  { %679 = vmatprep.subr.bf16.mxu1 %v1445_v56  ;;  %v1533_v56 = vmov 0  }
  0x40   :  { %723 = vmatpush1.bf16.msra.mxu0 %v1366_v36  ;;  %v1429_v36 = vld [vmem:[#allocation2 + $0x290] ss:$8 sps:$4 sm:$0xff]  }
  0x41   :  { %724 = vmatprep.subr.bf16.mxu0 %v1367_v37  ;;  %680 = vmatpush1.bf16.msra.mxu1 %v1450_v62  ;;  %v1437_v37 = vld [vmem:[#allocation2 + $0x2a4] ss:$8 sps:$4 sm:$0xff]   ;;  %v1491_v62 = vld [vmem:[%s1696_s3 + $0x30] sm:$0xff]  }
  0x42   :  { %681 = vmatprep.subr.bf16.mxu1 %v1451_v63  ;;  %v1492_v63 = vld [vmem:[%s1696_s3 + $0x78] sm:$0xff]  }
  0x44   :  { %725 = vmatpush1.bf16.msra.mxu0 %v1369_v40  ;;  %v1435_v40 = vld [vmem:[#allocation2 + $0x2a0] ss:$8 sps:$4 sm:$0xff]  }
  0x45   :  { %726 = vmatprep.subr.bf16.mxu0 %v1370_v41  ;;  %682 = vmatpush1.bf16.msra.mxu1 %v1456_v4  ;;  %v1443_v41 = vld [vmem:[#allocation2 + $0x2b4] ss:$8 sps:$4 sm:$0xff]  }
  0x46   :  { %683 = vmatprep.subr.bf16.mxu1 %v1457_v5 }
  0x48   :  { %727 = vmatpush1.bf16.msra.mxu0 %v1372_v44  ;;  %v1449_v44 = vld [vmem:[#allocation2 + $0x2c4] ss:$8 sps:$4 sm:$0xff]  }
  0x49   :  { %728 = vmatprep.subr.bf16.mxu0 %v1373_v45  ;;  %684 = vmatpush1.bf16.msra.mxu1 %v1462_v8  ;;  %v1447_v45 = vld [vmem:[#allocation2 + $0x2c0] ss:$8 sps:$4 sm:$0xff]  }
  0x4a   :  { %685 = vmatprep.subr.bf16.mxu1 %v1463_v9  ;;  %v153_v9 = vld [vmem:[%s1695_s2] sm:$0x3] }
  0x4c   :  { %729 = vmatpush1.bf16.msra.mxu0 %v1375_v48  ;;  %v1461_v48 = vld [vmem:[#allocation2 + $0x2e4] ss:$8 sps:$4 sm:$0xff]  }
  0x4d   :  { %730 = vmatprep.subr.bf16.mxu0 %v1376_v49  ;;  %686 = vmatpush1.bf16.msra.mxu1 %v1468_v13  ;;  %v1459_v49 = vld [vmem:[#allocation2 + $0x2e0] ss:$8 sps:$4 sm:$0xff]  }
  0x4e   :  { %687 = vmatprep.subr.bf16.mxu1 %v1469_v14 }
  0x50   :  { %731 = vmatpush1.bf16.msra.mxu0 %v1378_v51  ;;  %v1465_v51 = vld [vmem:[#allocation2 + $0x2f0] ss:$8 sps:$4 sm:$0xff]  }
  0x51   :  { %741 = vmatprep.subr.bf16.mxu0 %v1381_v54  ;;  %688 = vmatpush1.bf16.msra.mxu1 %v1474_v16  ;;  %v52_v54 = vpack.c.bf16 %v45_v52, %v45_v52 }
  0x52   :  { %689 = vmatprep.subr.bf16.mxu1 %v1475_v17 }
  0x53   :  { %733 = vmatmul.mubr.bf16.vlgmr.msra.gmra.mrb[0].mxu0 %v50_v57  ;;  %v47_v57 = vld [vmem:[%s1693_s0 + $0x30] sm:$0xff] }
  0x54   :  { %742 = vmatpush1.bf16.msra.mxu0 %v1379_v59  ;;  %773 = vmatprep.mubr.bf16.mxu0 %v53_v60  ;;  %v54_v58 = vpack.c.bf16 %v47_v57, %v47_v57  ;;  %v1488_v59 = vld [vmem:[%s1696_s3 + $0x68] sm:$0xff]  }
  0x55   :  { %743 = vmatprep.subr.bf16.mxu0 %v1384_v61  ;;  %690 = vmatpush1.bf16.msra.mxu1 %v1477_v20  ;;  %v1489_v60 = vld [vmem:[%s1696_s3 + $0x28] sm:$0xff]   ;;  %v1490_v61 = vld [vmem:[%s1696_s3 + $0x70] sm:$0xff]  }
  0x56   :  { %1262 = vmatprep.subr.bf16.mxu1 %v1478_v22 }
  0x58   :  { %744 = vmatpush1.bf16.msra.mxu0 %v1382_v1  ;;  %692 = vmatmul.mubr.bf16.vlgmr.msra.gmra.mrb[0].mxu1 %v48_v25  ;;  %v1534_v1 = vmov 0.0  }
  0x59   :  { %745 = vmatprep.subr.bf16.mxu0 %v1389_v3  ;;  %1263 = vmatpush3.bf16.msra.mxu1 %v1479_v26  ;;  %v1494_v26 = vld [vmem:[%s1698_s5] sm:$0xff]  }
  0x5a   :  { %1264 = vmatprep.subr.bf16.mxu1 %v1480_v27 }
  0x5c   :  { %746 = vmatpush1.bf16.msra.mxu0 %v1387_v6  ;;  %v155_v6 = vlaneseq }
  0x5d   :  { %747 = vmatprep.subr.bf16.mxu0 %v1395_v7  ;;  %1265 = vmatpush3.bf16.msra.mxu1 %v1481_v30  ;;  %v1497_v30 = vld [vmem:[%s1698_s5 + $0x18] sm:$0xff]  }
  0x5e   :  { %1266 = vmatprep.subr.bf16.mxu1 %v1482_v31  ;;  %v156_v7 = vshrl.u32 %v155_v6, 7  ;;  %v1498_v31 = vld [vmem:[%s1698_s5 + $0x20] sm:$0xff]  }
  0x60   :  { %748 = vmatpush1.bf16.msra.mxu0 %v1393_v10  ;;  %v157_v8 = vsub.s32 0, %v156_v7  ;;  %v161_v10 = vsub.s32 1, %v156_v7 }
  0x61   :  { %749 = vmatprep.subr.bf16.mxu0 %v1401_v11  ;;  %1267 = vmatpush3.bf16.msra.mxu1 %v1483_v34  ;;  %v1501_v34 = vld [vmem:[%s1698_s5 + $0x38] sm:$0xff]  }
  0x62   :  { %1268 = vmatprep.subr.bf16.mxu1 %v1484_v35  ;;  %v158_v11 = vrot.slane %v153_v9, %v157_v8 }
  0x64   :  { %750 = vmatpush1.bf16.msra.mxu0 %v1399_v12  ;;  %v162_v12 = vrot.slane %v153_v9, %v161_v10 }
  0x65   :  { %751 = vmatprep.subr.bf16.mxu0 %v1407_v15  ;;  %1269 = vmatpush3.bf16.msra.mxu1 %v1485_v38 }
  0x66   :  { %1270 = vmatprep.subr.bf16.mxu1 %v1486_v39 }
  0x68   :  { %752 = vmatpush1.bf16.msra.mxu0 %v1405_v18 }
  0x69   :  { %753 = vmatprep.subr.bf16.mxu0 %v1413_v19  ;;  %1271 = vmatpush3.bf16.msra.mxu1 %v1487_v42 }
  0x6a   :  { %1272 = vmatprep.subr.bf16.mxu1 %v1488_v59 }
  0x6c   :  { %754 = vmatpush1.bf16.msra.mxu0 %v1411_v23 }
  0x6d   :  { %755 = vmatprep.subr.bf16.mxu0 %v1419_v24  ;;  %1273 = vmatpush3.bf16.msra.mxu1 %v1489_v60 }
  0x6e   :  { %1274 = vmatprep.subr.bf16.mxu1 %v1490_v61 }
  0x70   :  { %756 = vmatpush1.bf16.msra.mxu0 %v1417_v28  ;;  %v1495_v28 = vld [vmem:[%s1698_s5 + $0x8] sm:$0xff]  }
  0x71   :  { %757 = vmatprep.subr.bf16.mxu0 %v1425_v29  ;;  %1275 = vmatpush3.bf16.msra.mxu1 %v1491_v62  ;;  %v1496_v29 = vld [vmem:[%s1698_s5 + $0x10] sm:$0xff]  }
  0x72   :  { %1276 = vmatprep.subr.bf16.mxu1 %v1492_v63 }
  0x74   :  { %758 = vmatpush1.bf16.msra.mxu0 %v1423_v32  ;;  %v1499_v32 = vld [vmem:[%s1698_s5 + $0x28] sm:$0xff]  }
  0x75   :  { %759 = vmatprep.subr.bf16.mxu0 %v1431_v33  ;;  %1277 = vmatpush3.bf16.msra.mxu1 %v1493_v0  ;;  %v1500_v33 = vld [vmem:[%s1698_s5 + $0x30] sm:$0xff]  }
  0x76   :  { %1293 = vmatprep.subr.bf16.mxu1 %v1534_v1 }
  0x78   :  { %760 = vmatpush1.bf16.msra.mxu0 %v1429_v36  ;;  %v1236_v36 = vld [vmem:[%s1697_s4] ss:$0 sm:$0xff] }
  0x79   :  { %761 = vmatprep.subr.bf16.mxu0 %v1437_v37 }
  0x7c   :  { %762 = vmatpush1.bf16.msra.mxu0 %v1435_v40 }
  0x7d   :  { %763 = vmatprep.subr.bf16.mxu0 %v1443_v41 }
  0x80   :  { %764 = vmatpush1.bf16.msra.mxu0 %v1441_v43 }
  0x81   :  { %765 = vmatprep.subr.bf16.mxu0 %v1449_v44 }
  0x84   :  { %766 = vmatpush1.bf16.msra.mxu0 %v1447_v45  ;;  %v1253_v45 = vld [vmem:[%s1699_s6] ss:$0 sm:$0xff] }
  0x85   :  { %767 = vmatprep.subr.bf16.mxu0 %v1455_v46 }
  0x88   :  { %768 = vmatpush1.bf16.msra.mxu0 %v1453_v47 }
  0x89   :  { %769 = vmatprep.subr.bf16.mxu0 %v1461_v48 }
  0x8c   :  { %770 = vmatpush1.bf16.msra.mxu0 %v1459_v49 }
  0x8d   :  { %771 = vmatprep.subr.bf16.mxu0 %v1467_v50 }
  0x90   :  { %772 = vmatpush1.bf16.msra.mxu0 %v1465_v51 }
  0x91   :  { %782 = vmatprep.subr.bf16.mxu0 %v1473_v53 }
  0x93   :  { %774 = vmatmul.mubr.bf16.vlgmr.msra.gmra.mrb[0].mxu0 %v52_v54 }
  0x94   :  { %783 = vmatpush1.bf16.msra.mxu0 %v1471_v55  ;;  %814 = vmatprep.mubr.bf16.mxu0 %v1533_v56 }
  0x9f   :  { %1235 = vmatmul.mubr.msk.bf16.vlgmr.msra.gmra.mrb[0].mxu0 %vm655_vm0, %v54_v58 }
 0x12b   :  { %v693_v2 = vpop.f32.mrb[0].mxu1 }
 0x12c   :  { %v695_v3 = vpop.f32.mrb[1].mxu1  ;;  %v694_v13 = vadd.f32 %v693_v2, %v158_v11 }
 0x12d   :  { %v697_v4 = vpop.f32.mrb[2].mxu1  ;;  %v696_v14 = vadd.f32 %v695_v3, %v162_v12 }
 0x12e   :  { %v698_v5 = vpop.f32.mrb[3].mxu1 }
 0x172   :  { %v816_v15 = vpop.f32.mrb[0].mxu0 }
 0x173   :  { %v1314_v16 = vadd.f32 %v816_v15, %v694_v13  ;;  %v818_v17 = vpop.f32.mrb[1].mxu0 }
 0x174   :  { %v1316_v18 = vadd.f32 %v818_v17, %v696_v14  ;;  %v820_v19 = vpop.f32.mrb[2].mxu0 }
 0x175   :  { %vm823_vm1 = vcmp.gt.f32.partialorder %v1314_v16, 0.0  ;;  %v825_v20 = vmul.f32 0.01, %v1314_v16  ;;  %v821_v21 = vpop.f32.mrb[3].mxu0 }
 0x176   :  { %vm824_vm2 = vcmp.gt.f32.partialorder %v1316_v18, 0.0  ;;  %v826_v22 = vmul.f32 0.01, %v1316_v18 }
 0x177   :  { %v827_v23 = vsel %vm823_vm1, %v1314_v16, %v825_v20 }
 0x178   :  { %v828_v24 = vsel %vm824_vm2, %v1316_v18, %v826_v22  ;;  %v829_v27 = vpack.c.bf16 %v827_v23, %v827_v23 }
 0x179   :  { %v830_v25 = vpack.c.bf16 %v828_v24, %v828_v24 }
 0x17b   :  { %998 = vmatprep.mubr.bf16.mxu1 %v830_v25 }
 0x17c   :  { %999 = vmatmul.mubr.bf16.vlgmr.msra.gmra.mrb[4].mxu1 %v829_v27 }
 0x17d   :  { %1294 = vmatpush3.bf16.msra.mxu1 %v1494_v26  ;;  %1309 = vmatprep.mubr.msk.bf16.mxu1 %vm1535_vm3, %v1534_v1 }
 0x17e   :  { %1295 = vmatprep.subr.bf16.mxu1 %v1534_v1 }
 0x181   :  { %1296 = vmatpush3.bf16.msra.mxu1 %v1495_v28 }
 0x182   :  { %1297 = vmatprep.subr.bf16.mxu1 %v1534_v1 }
 0x185   :  { %1298 = vmatpush3.bf16.msra.mxu1 %v1496_v29 }
 0x186   :  { %1299 = vmatprep.subr.bf16.mxu1 %v1534_v1 }
 0x189   :  { %1300 = vmatpush3.bf16.msra.mxu1 %v1497_v30 }
 0x18a   :  { %1301 = vmatprep.subr.bf16.mxu1 %v1534_v1 }
 0x18d   :  { %1302 = vmatpush3.bf16.msra.mxu1 %v1498_v31 }
 0x18e   :  { %1303 = vmatprep.subr.bf16.mxu1 %v1534_v1 }
 0x191   :  { %1304 = vmatpush3.bf16.msra.mxu1 %v1499_v32 }
 0x192   :  { %1305 = vmatprep.subr.bf16.mxu1 %v1534_v1 }
 0x195   :  { %1306 = vmatpush3.bf16.msra.mxu1 %v1500_v33 }
 0x196   :  { %1307 = vmatprep.subr.bf16.mxu1 %v1534_v1 }
 0x199   :  { %1308 = vmatpush3.bf16.msra.mxu1 %v1501_v34 }
 0x24f   :  { %v1278_v35 = vpop.f32.mrb[4].mxu1 }
 0x250   :  { %v1279_v37 = vpop.f32.mrb[5].mxu1 }
 0x251   :  { %v1280_v38 = vadd.f32 %v1279_v37, %v1278_v35  ;;  %v1281_v39 = vpop.f32.mrb[6].mxu1 }
 0x252   :  { %v1282_v40 = vpop.f32.mrb[7].mxu1 }
 0x253   :  { %v1001_v41 = vadd.f32 %v1280_v38, %v1236_v36 }
 0x255   :  { %vm1006_vm4 = vcmp.gt.f32.partialorder %v1001_v41, 0.0  ;;  %v1007_v42 = vmul.f32 0.01, %v1001_v41 }
 0x257   :  { %v1008_v43 = vsel %vm1006_vm4, %v1001_v41, %v1007_v42 }
 0x258   :  { %v1009_v44 = vpack.c.bf16 %v1008_v43, %v1008_v43 }
 0x25a   :  { %1310 = vmatmul.mubr.bf16.vlgmr.msra.gmra.mrb[8].mxu1 %v1009_v44 }
 0x32d   :  { %v1115_v46 = vpop.f32.mrb[8].mxu1 }
 0x32e   :  { %v1116_v47 = vadd.f32 %v1253_v45, %v1115_v46  ;;  %v1311_v48 = vpop.f32.mrb[9].mxu1 }
 0x32f   :  { %v1118_v49 = vpop.f32.mrb[10].mxu1 }
 0x330   :  { %1121 = vmax.xlane.f32.xlu0 %v1116_v47  ;;  %v1312_v50 = vpop.f32.mrb[11].mxu1 }
 0x3bd   :  { %v1122_v51 = vpop.xlane.xlu0 %1121 }
 0x3be   :  { %v1123_v52 = vsub.f32 %v1116_v47, %v1122_v51 }
 0x3c0   :  { %v1124_v53 = vmul.f32 1.442695, %v1123_v52 }
 0x3c2   :  { %1502 = vpow2.f32 %v1124_v53 }
 0x3cc   :  { %v1503_v54 = vpop.eup %1502 }
 0x3cd   :  { %1126 = vadd.xlane.f32.xlu0 %v1503_v54 }
 0x45a   :  { %v1127_v55 = vpop.xlane.xlu0 %1126 }
 0x45b   :  { %1504 = vrcp.f32 %v1127_v55 }
 0x465   :  { %v1505_v56 = vpop.eup %1504 }
 0x466   :  { %v1129_v57 = vmul.f32 %v1505_v56, %v1503_v54 }
 0x468   :  { %v1130_v58 = vpack.c.bf16 %v1129_v57, %v1129_v57 }
 0x46a   :  { %1131 = vst [vmem:[%s1700_s7] sm:$0xf] %v1130_v58 }
 0x46b   :  { %1136 = vsyncpa [#allocation3], 1 }

</bundles_post_ra>
